<compile_context>
chip_gen: v5e
topology: v5e:2x2
jax: 0.10.0
libtpu: 0.0.40
codegen_flags: <defaults>
</compile_context>

<pallas_src>
import functools

import jax
import jax.numpy as jnp
import numpy as np
from jax import lax
from jax.experimental import pallas as pl
from jax.experimental.pallas import tpu as pltpu

_MIB = 1024 * 1024


def _round_up(x, m):
    return (x + m - 1) // m * m


def _sublane_granularity(itemsize):
    # Minimum sublane tile per dtype: 8 rows (f32), 16 (bf16), 32 (int8/fp8).
    return {4: 8, 2: 16, 1: 32}.get(itemsize, 8)


def _vmem_policy():
    """Generation-aware (block budget, scoped vmem limit, likely-2-TensorCores)."""
    cap = 64 * _MIB
    try:
        info = pltpu.get_tpu_info()
        cap = int(getattr(info, "vmem_capacity_bytes", cap) or cap)
    except Exception:
        pass
    if cap >= 128 * _MIB:           # v5e / v6e: 128 MiB physical, 1 TC/chip
        return 64 * _MIB, 96 * _MIB, False
    if cap >= 64 * _MIB:            # v7x-like: 64 MiB physical, 2 TCs/chip
        return 20 * _MIB, 32 * _MIB, True
    return cap // 4, cap // 2, False  # unknown / small-VMEM fallback


def _pick_channel_tile(C, Lin_pad, Lp_out, M, K, itemsize, budget_bytes):
    """Largest channel tile (multiple of the dtype sublane granularity, divisor
    of C) whose double-buffered in/out/weight blocks fit the VMEM budget."""
    g = _sublane_granularity(itemsize)

    def footprint(tc):
        # double-buffered input + output blocks + weight block (no scratch)
        return 2 * itemsize * tc * (Lin_pad + M * Lp_out + M * K)

    cands = [t for t in (2048, 1024, 512, 256, 128, 64, 32, 16, 8)
             if t % g == 0 and t <= C and C % t == 0]
    for t in cands:
        if footprint(t) <= budget_bytes:
            return t
    return cands[-1] if cands else C


def _dwconv1d_kernel(x_ref, w_ref, o_ref, *, K, dilation, M, Lp_out, SC, LC,
                     compute_dtype):
    """One grid step: (TC, Lin_pad) padded input channels -> (TC, M*Lp_out).

    x_ref : (TC, Lin_pad)   input slab, 'same' halo already zero-padded
    w_ref : (TC, M*K)       taps; column m*K+k is tap k of multiplier m
    o_ref : (TC, M*Lp_out)  lanes [m*Lp_out, (m+1)*Lp_out) hold output row m

    The MAC streams over (SC-row, LC-lane) chunks: each shifted input chunk is
    loaded straight into vregs and consumed immediately for all M outputs —
    no staging scratch, no materialized full-tile shifted copies, and the live
    set stays inside the 64-vreg budget.
    """
    TC = x_ref.shape[0]
    n_sc = TC // SC
    n_lc = Lp_out // LC

    def run_channel_slab(ch_idx):
        # Weight columns loaded / cast / sliced once per channel sub-slab
        # (hoisted out of the lane loop; JAX does not CSE these slices).
        w_slab = w_ref[ch_idx, :].astype(compute_dtype)           # (SC, M*K)
        wcols = [w_slab[:, c:c + 1] for c in range(M * K)]        # (SC, 1)

        def do_chunk(col0):
            # K shifted chunks, consumed immediately for all M outputs.
            xs = [x_ref[ch_idx, pl.ds(col0 + k * dilation, LC)]
                  .astype(compute_dtype) for k in range(K)]
            for m in range(M):
                acc = xs[0] * wcols[m * K]
                for k in range(1, K):
                    acc = acc + xs[k] * wcols[m * K + k]
                o_ref[ch_idx, pl.ds(m * Lp_out + col0, LC)] = (
                    acc.astype(o_ref.dtype))

        if n_lc <= 2:
            for j in range(n_lc):             # static starts -> aligned stores
                do_chunk(j * LC)
        else:
            def lane_body(j, carry):
                do_chunk(pl.multiple_of(j * LC, LC))
                return carry
            lax.fori_loop(0, n_lc, lane_body, 0)

    if n_sc == 1:
        run_channel_slab(slice(None))
    else:
        def chan_body(si, carry):
            run_channel_slab(pl.ds(pl.multiple_of(si * SC, SC), SC))
            return carry
        lax.fori_loop(0, n_sc, chan_body, 0)


def depthwise_conv1d(x, weight, *, dilation, depth_multiplier):
    """x: (N, C, L); weight: (C*M, 1, K) in PyTorch Conv1d layout.

    Matches torch.nn.Conv1d(C, C*M, K, stride=1, groups=C, dilation=dilation,
    padding='same', bias=False):
      out[n, c*M+m, i] = sum_k w[c*M+m, 0, k] * x[n, c, i - pad_l + k*dilation]
    with pad_l = dilation*(K-1) // 2 (PyTorch puts the extra pad on the right).
    """
    N, C, L = x.shape
    CM, _, K = weight.shape
    M = depth_multiplier
    assert CM == C * M

    total = dilation * (K - 1)
    pad_l = total // 2                       # PyTorch 'same': left = total//2

    # Lane-dense padded extents (multiples of 128): full unmasked vst / DMA.
    Lp_out = _round_up(L, 128)
    Lin_pad = _round_up(Lp_out + total, 128)
    pad_right = Lin_pad - L - pad_l          # >= total - pad_l (right halo)
    x_p = (jnp.pad(x, ((0, 0), (0, 0), (pad_l, pad_right)))
           if (pad_l or pad_right) else x)

    # (C*M, 1, K) -> (C, M*K): row c holds the taps of outputs c*M .. c*M+M-1.
    w2d = weight.reshape(C, M * K)

    itemsize = x.dtype.itemsize
    budget, vmem_limit, maybe_two_cores = _vmem_policy()
    TC = _pick_channel_tile(C, Lin_pad, Lp_out, M, K, itemsize, budget)
    g = _sublane_granularity(itemsize)
    if maybe_two_cores:
        # Keep both TensorCores fed: prefer more channel-tile grid steps when
        # the parallel grid would otherwise be under-populated.
        while N * (C // TC) < 4 and TC % (2 * g) == 0:
            TC //= 2

    # In-kernel chunk sizes: SC-row channel sub-slabs x LC-lane chunks, chosen
    # so ~(K shifted chunks + accumulator + slack) stays within ~48 vregs.
    SC = g if TC % g == 0 else TC
    LC = 128
    for cand in (1024, 512, 256, 128):
        if Lp_out % cand == 0 and (K + 3) * SC * cand * 4 <= 48 * 4096:
            LC = cand
            break

    # bf16 multiply/accumulate for bf16 inputs (v6e/v7x bf16 VPU); f32 else.
    compute_dtype = jnp.bfloat16 if x.dtype == jnp.bfloat16 else jnp.float32

    kernel = functools.partial(
        _dwconv1d_kernel, K=K, dilation=dilation, M=M, Lp_out=Lp_out,
        SC=SC, LC=LC, compute_dtype=compute_dtype)

    out = pl.pallas_call(
        kernel,
        out_shape=jax.ShapeDtypeStruct((N, C, M * Lp_out), x.dtype),
        grid=(C // TC, N),   # batch innermost -> weight block re-fetch skipped
        in_specs=[
            pl.BlockSpec((None, TC, Lin_pad), lambda ci, n: (n, ci, 0)),
            pl.BlockSpec((TC, M * K), lambda ci, n: (ci, 0)),
        ],
        out_specs=pl.BlockSpec((None, TC, M * Lp_out), lambda ci, n: (n, ci, 0)),
        compiler_params=pltpu.CompilerParams(
            dimension_semantics=("parallel", "parallel"),
            vmem_limit_bytes=int(vmem_limit)),
        cost_estimate=pl.CostEstimate(
            flops=2 * K * M * N * C * L,
            transcendentals=0,
            bytes_accessed=itemsize * (N * C * (Lin_pad + M * Lp_out)
                                       + C * M * K)),
    )(x_p, w2d)

    # (N, C, M*Lp_out) -> (N, C, M, Lp_out) is metadata-only; crop the lane
    # padding (if any) and flatten to PyTorch's (N, C*M, L) channel order.
    out = out.reshape(N, C, M, Lp_out)
    if Lp_out != L:
        out = out[..., :L]
    return out.reshape(N, C * M, L)


def _reference(x, weight, *, dilation):
    """Pure-JAX reference matching torch.nn.Conv1d(groups=C, padding='same')."""
    _, C, _ = x.shape
    total = dilation * (weight.shape[-1] - 1)
    pad_l = total // 2
    return lax.conv_general_dilated(
        x, weight,
        window_strides=(1,),
        padding=[(pad_l, total - pad_l)],
        rhs_dilation=(dilation,),
        dimension_numbers=("NCH", "OIH", "NCH"),
        feature_group_count=C,
    )


if __name__ == "__main__":
    key = jax.random.PRNGKey(0)
    configs = [
        # (N, C, L, K, dilation, depth_multiplier)
        (2, 4, 16, 3, 2, 2),      # module's toy config (sub-8 C, lane crop)
        (2, 16, 256, 5, 3, 2),    # lane-dense L, multiple channel sub-slabs
        (1, 32, 384, 3, 1, 1),    # dynamic lane-chunk loop, depth_multiplier=1
        (2, 8, 200, 4, 1, 2),     # even K (asymmetric 'same' pad), lane crop
    ]
    for (N, C, L, K, dil, M) in configs:
        key, kx, kw = jax.random.split(key, 3)
        x = jax.random.normal(kx, (N, C, L), dtype=jnp.float32)
        bound = 1.0 / np.sqrt(K)               # kaiming-uniform-like, fan_in=K
        w = jax.random.uniform(kw, (C * M, 1, K), minval=-bound, maxval=bound,
                               dtype=jnp.float32)
        out = jax.block_until_ready(
            depthwise_conv1d(x, w, dilation=dil, depth_multiplier=M))
        ref = _reference(x, w, dilation=dil)
        assert out.shape == (N, C * M, L)
        np.testing.assert_allclose(np.asarray(out), np.asarray(ref),
                                   rtol=1e-5, atol=1e-5)
    print("KERNEL_OK")
</pallas_src>

<mosaic_0001>
module attributes {stable_mosaic.version = 11 : i64} {
  func.func @_dwconv1d_kernel(%arg0: i32, %arg1: i32, %arg2: memref<1x4x256xf32, #tpu.memory_space<vmem>>, %arg3: memref<4x6xf32, #tpu.memory_space<vmem>>, %arg4: memref<1x4x256xf32, #tpu.memory_space<vmem>>) attributes {dimension_semantics = [#tpu.dimension_semantics<parallel>, #tpu.dimension_semantics<parallel>], iteration_bounds = array<i64: 1, 2>, scalar_prefetch = 0 : i64, scratch_operands = 0 : i64, tpu.core_type = #tpu.core_type<tc>, window_params = [{transform_indices = @transform_0, window_bounds = array<i64: 1, 4, 256>}, {transform_indices = @transform_1, window_bounds = array<i64: 4, 6>}, {transform_indices = @transform_2, window_bounds = array<i64: 1, 4, 256>}]} {
    %c0 = arith.constant 0 : index
    %c0_0 = arith.constant 0 : index
    %0 = vector.load %arg3[%c0, %c0_0] : memref<4x6xf32, #tpu.memory_space<vmem>>, vector<4x6xf32>
    %1 = vector.extract_strided_slice %0 {offsets = [0, 0], sizes = [4, 1], strides = [1, 1]} : vector<4x6xf32> to vector<4x1xf32>
    %2 = vector.extract_strided_slice %0 {offsets = [0, 1], sizes = [4, 1], strides = [1, 1]} : vector<4x6xf32> to vector<4x1xf32>
    %3 = vector.extract_strided_slice %0 {offsets = [0, 2], sizes = [4, 1], strides = [1, 1]} : vector<4x6xf32> to vector<4x1xf32>
    %4 = vector.extract_strided_slice %0 {offsets = [0, 3], sizes = [4, 1], strides = [1, 1]} : vector<4x6xf32> to vector<4x1xf32>
    %5 = vector.extract_strided_slice %0 {offsets = [0, 4], sizes = [4, 1], strides = [1, 1]} : vector<4x6xf32> to vector<4x1xf32>
    %6 = vector.extract_strided_slice %0 {offsets = [0, 5], sizes = [4, 1], strides = [1, 1]} : vector<4x6xf32> to vector<4x1xf32>
    %c0_1 = arith.constant 0 : index
    %c0_2 = arith.constant 0 : index
    %c0_3 = arith.constant 0 : index
    %7 = vector.load %arg2[%c0_1, %c0_2, %c0_3] : memref<1x4x256xf32, #tpu.memory_space<vmem>>, vector<1x4x128xf32>
    %8 = vector.shape_cast %7 : vector<1x4x128xf32> to vector<4x128xf32>
    %c0_4 = arith.constant 0 : index
    %c0_5 = arith.constant 0 : index
    %c2 = arith.constant 2 : index
    %9 = vector.load %arg2[%c0_4, %c0_5, %c2] : memref<1x4x256xf32, #tpu.memory_space<vmem>>, vector<1x4x128xf32>
    %10 = vector.shape_cast %9 : vector<1x4x128xf32> to vector<4x128xf32>
    %c0_6 = arith.constant 0 : index
    %c0_7 = arith.constant 0 : index
    %c4 = arith.constant 4 : index
    %11 = vector.load %arg2[%c0_6, %c0_7, %c4] : memref<1x4x256xf32, #tpu.memory_space<vmem>>, vector<1x4x128xf32>
    %12 = vector.shape_cast %11 : vector<1x4x128xf32> to vector<4x128xf32>
    %13 = vector.broadcast %1 : vector<4x1xf32> to vector<4x128xf32>
    %14 = arith.mulf %8, %13 : vector<4x128xf32>
    %15 = vector.broadcast %2 : vector<4x1xf32> to vector<4x128xf32>
    %16 = arith.mulf %10, %15 : vector<4x128xf32>
    %17 = arith.addf %14, %16 : vector<4x128xf32>
    %18 = vector.broadcast %3 : vector<4x1xf32> to vector<4x128xf32>
    %19 = arith.mulf %12, %18 : vector<4x128xf32>
    %20 = arith.addf %17, %19 : vector<4x128xf32>
    %c0_8 = arith.constant 0 : index
    %c0_9 = arith.constant 0 : index
    %c0_10 = arith.constant 0 : index
    %21 = vector.load %arg4[%c0_8, %c0_9, %c0_10] : memref<1x4x256xf32, #tpu.memory_space<vmem>>, vector<1x4x128xf32>
    %22 = vector.shape_cast %21 : vector<1x4x128xf32> to vector<4x128xf32>
    %23 = vector.shape_cast %20 : vector<4x128xf32> to vector<1x4x128xf32>
    tpu.vector_store %arg4[%c0_8, %c0_9, %c0_10], %23 {strides = array<i32>} : memref<1x4x256xf32, #tpu.memory_space<vmem>>, vector<1x4x128xf32>,
    %24 = vector.broadcast %4 : vector<4x1xf32> to vector<4x128xf32>
    %25 = arith.mulf %8, %24 : vector<4x128xf32>
    %26 = vector.broadcast %5 : vector<4x1xf32> to vector<4x128xf32>
    %27 = arith.mulf %10, %26 : vector<4x128xf32>
    %28 = arith.addf %25, %27 : vector<4x128xf32>
    %29 = vector.broadcast %6 : vector<4x1xf32> to vector<4x128xf32>
    %30 = arith.mulf %12, %29 : vector<4x128xf32>
    %31 = arith.addf %28, %30 : vector<4x128xf32>
    %c0_11 = arith.constant 0 : index
    %c0_12 = arith.constant 0 : index
    %c128 = arith.constant 128 : index
    %32 = vector.load %arg4[%c0_11, %c0_12, %c128] : memref<1x4x256xf32, #tpu.memory_space<vmem>>, vector<1x4x128xf32>
    %33 = vector.shape_cast %32 : vector<1x4x128xf32> to vector<4x128xf32>
    %34 = vector.shape_cast %31 : vector<4x128xf32> to vector<1x4x128xf32>
    tpu.vector_store %arg4[%c0_11, %c0_12, %c128], %34 {strides = array<i32>} : memref<1x4x256xf32, #tpu.memory_space<vmem>>, vector<1x4x128xf32>,
    return
  }
  func.func @transform_0(%arg0: i32, %arg1: i32) -> (i32, i32, i32) {
    %c0_i32 = arith.constant 0 : i32
    %c0_i32_0 = arith.constant 0 : i32
    return %arg1, %arg0, %c0_i32 : i32, i32, i32
  }
  func.func @transform_1(%arg0: i32, %arg1: i32) -> (i32, i32) {
    %c0_i32 = arith.constant 0 : i32
    %c0_i32_0 = arith.constant 0 : i32
    return %arg0, %c0_i32 : i32, i32
  }
  func.func @transform_2(%arg0: i32, %arg1: i32) -> (i32, i32, i32) {
    %c0_i32 = arith.constant 0 : i32
    %c0_i32_0 = arith.constant 0 : i32
    return %arg1, %arg0, %c0_i32 : i32, i32, i32
  }
}

</mosaic_0001>

<bundles_post_ra>
// kernel: tpu_custom_call.1
= control target key start
LH: loop header
LB: loop body
LE: loop exit
PB: predicated region body
PF: predicated region fallthrough
CT: control target
= control target key end

     0   :  { %7 = vsyncpa [#allocation3], 0  ;;  %s823_s0 = inlined_call_operand.hbm [shape: f32[2,4,256], index: 0, kind: input, shape index: {}]   ;;  %s824_s1 = inlined_call_operand.hbm [shape: f32[4,6], index: 1, kind: input, shape index: {}]   ;;  %s825_s2 = inlined_call_operand.hbm [shape: f32[2,4,256], index: 2, kind: output, shape index: {}]  }
   0x1   :  { %9 = vsyncpa [#allocation3 + $0x1], 0 }
   0x2   :  { %10 = vsyncpa [#allocation6], 0 }
   0x3   :  { %11 = vsyncpa [#allocation4], 0 }
   0x4   :  { %13 = vsyncpa [#allocation4 + $0x1], 0  ;;  %s662_s9 = smov 0   ;;  %s664_s10 = smov 0  }
   0x5   :  { %s666_s11 = smov 0   ;;  %s668_s12 = smov 0  }
   0x6   :  { %s670_s13 = smov 0   ;;  %s672_s14 = smov 0  }
   0x7 LB: > { %s383_s15 = sadd.s32 4294967295, %s636_s14   ;;  %s384_s16 = sadd.s32 4294967294, %s636_s14   ;;  %s636_s14 = sphi %s672_s14, %s19_s14   ;;  %s632_s13 = sphi %s670_s13, %s837_s13   ;;  %s628_s12 = sphi %s668_s12, %s836_s12   ;;  %s624_s11 = sphi %s666_s11, %s835_s11   ;;  %s620_s10 = sphi %s664_s10, %s834_s10   ;;  %s616_s9 = sphi %s662_s9, %s833_s9  }
   0x8   : > { %p53_p0 = scmp.ne.s32.totalorder %s620_s10, %s616_s9  ;;  %p696_p1 = scmp.eq.s32.totalorder %s383_s15, 0 }
   0x9   : > { %p700_p2 = scmp.eq.s32.totalorder %s383_s15, 1  ;;  %p111_p3 = scmp.eq.s32.totalorder %s384_s16, 1 }
   0xa   : > { %p706_p4 = por %p696_p1, %p53_p0  ;;  %p385_p5 = scmp.ge.s32.totalorder %s636_s14, 1 }
   0xb   : > { %p711_p6 = por %p111_p3, %p53_p0  ;;  %p118_p7 = scmp.lt.s32.totalorder %s636_s14, 3 }
   0xc   : > { %s132_s23 = sshll.u32 %s824_s1, 4  ;;  %p387_p9 = scmp.ge.s32.totalorder %s636_s14, 2  ;;  %s133_s23 = int_to_ptr.hbm [resolvable:$true] %s132_s23 }
   0xd   : > { %p719_p8 = pnand %p385_p5, %p118_p7  ;;  %s638_s25 = smov [#allocation5]  }
   0xe   : > { %s134_s26 = sshll.u32 %s638_s25, 4  ;;  %s28_s27 = sadd.s32 1, %s632_s13  ;;  %s135_s26 = int_to_ptr.vmem [resolvable:$true] %s134_s26 }
   0xf   : > { %p410_p10 = pneg %p719_p8  ;;  %p29_p12 = scmp.ge.s32.totalorder %s28_s27, 2 }
  0x10   : > { %s40_s28 = sadd.s32 1, %s624_s11  ;;  %p47_p13 = scmp.ne.s32.totalorder %s624_s11, %s620_s10 }
  0x11   : > { %p411_p11 = pnand %p410_p10, %p696_p1  ;;  %p48_p0 = scmp.eq.s32.totalorder %s636_s14, 0 }
  0x12   : > { %s839_s27 = smov (%p29_p12, %s28_s27), 0  ;;  %p741_p5 = por %p700_p2, %p47_p13 }
  0x13   : > { %413 = dma.hbm_to_vmem [thread:$0]  (!%p411_p11), %s133_s23, 64, %s135_s26, [#allocation6]  }
  0x14   : > { %p735_p3 = por %p48_p0, %p47_p13  ;;  %s35_s3 = ssub.s32 %s632_s13, %s839_s27 }
  0x15   : > { %p423_p7 = scmp.lt.s32.totalorder %s636_s14, 2  ;;  %p38_p10 = scmp.eq.s32.totalorder %s35_s3, 0 }
  0x16   : > { %s145_s4 = sand.u32 1, %s624_s11   ;;  %s400_s7 = sshll.u32 %s632_s13, 3 }
  0x17   : > { %s388_s5 = sshll.u32 %s145_s4, 3  ;;  %s156_s16 = scalar_lea.hbm %s823_s0, %s400_s7 }
  0x18   : > { %s750_s6 = scalar_select %p38_p10, %s624_s11, %s40_s28  }
  0x19   : > { %s149_s21 = scalar_lea.vmem [#allocation2], %s388_s5  ;;  %s158_s18 = sshll.u32 %s156_s16, 4  ;;  %s159_s18 = int_to_ptr.hbm [resolvable:$true] %s158_s18 }
  0x1a   : > { %s160_s22 = sshll.u32 %s149_s21, 4  ;;  %p415_p2 = pnand %p423_p7, %p735_p3  ;;  %s161_s22 = int_to_ptr.vmem [resolvable:$true] %s160_s22 }
  0x1b   : > { %s146_s23 = scalar_lea.sflag [#allocation3], %s145_s4  ;;  %169 = sbr.rel (%p719_p8) target bundleno = 286 (0x11e), region = 28 }
  0x1c   : > { %417 = dma.hbm_to_vmem [thread:$0]  (!%p415_p2), %s159_s18, 128, %s161_s22, %s146_s23  }
  0x1d   : > { %s761_s25 = sand.u32 (!%p719_p8), 1, %s620_s10  }
  0x1e   : > { %s392_s26 = sshll.u32 (!%p719_p8), %s761_s25, 3  ;;  %s172_s28 = scalar_lea.sflag (!%p719_p8), [#allocation3], %s761_s25 }
  0x1f   : > { %s767_s3 = scalar_lea.vmem (!%p719_p8), [#allocation2], %s392_s26 }
  0x20   : > { %603 = dma.done.wait (%p706_p4), %s172_s28, 128  }
  0x21   : > { %605 = vsyncadd (%p706_p4), %s172_s28, 4294967168 }
  0x22   : > { %607 = dma.done.wait (%p696_p1), [#allocation6], 64  }
  0x23   : > { %609 = vsyncadd (%p696_p1), [#allocation6], 4294967232  ;;  %v639_v0 = vmov 2   ;;  %v640_v1 = vmov 1   ;;  %v202_v2 = vld [vmem:[#allocation5] sm:$0xf] }
  0x24   : > { %485 = vset.pattern.permute.xlu1 %v639_v0  ;;  %483 = vset.pattern.permute.xlu0 %v640_v1  ;;  %v641_v3 = vmov 5   ;;  %v642_v4 = vmov 4   ;;  %v643_v5 = vmov 0   ;;  %v644_v6 = vmov 3   ;;  %v204_v7 = vld [vmem:[%s767_s3] sm:$0xff]  ;;  %s645_s17 = smov 124  }
  0x25   : > { %225 = vperm.xlu1 %485, %v202_v2   ;;  %212 = vperm.xlu0 %483, %v202_v2   ;;  %s646_s19 = smov 126   ;;  %v203_v19 = vld [vmem:[%s767_s3] sm:$0xf]  ;;  %vm220_vm0 = vcmask 1031168   ;;  %vm233_vm1 = vcmask 1014784   ;;  %s401_s24 = sshll.u32 %s628_s12, 3 }
  0x26   : > { %488 = vset.pattern.permute.xlu2 %v644_v6  ;;  %s201_s29 = scalar_lea.vmem [#allocation7], %s392_s26  ;;  %s282_s7 = scalar_lea.hbm %s825_s2, %s401_s24 }
  0x27   : > { %s284_s8 = sshll.u32 %s201_s29, 4  ;;  %s286_s15 = sshll.u32 %s282_s7, 4  ;;  %s285_s8 = int_to_ptr.vmem [resolvable:$true] %s284_s8  ;;  %s287_s15 = int_to_ptr.hbm [resolvable:$true] %s286_s15 }
  0x28   : > { %s269_s12 = scalar_lea.sflag [#allocation4], %s761_s25  ;;  %s564_s16 = sshra.s32 %s287_s15, 4  ;;  %s565_s16 = int_to_ptr.hbm [resolvable:$true] %s564_s16 }
  0x29   : > { %s566_s21 = scalar_lea.hbm %s565_s16, 8  ;;  %s570_s23 = scalar_lea.hbm %s825_s2, 16 }
  0x2a   : > { %p567_p1 = scmp.ne.s32.totalorder %s565_s16, %s566_s21  ;;  %p571_p11 = scmp.lt.s32.totalorder %s565_s16, %s825_s2 }
  0x2b   : > { %p572_p12 = scmp.lt.s32.totalorder %s570_s23, %s566_s21 }
  0x2c   : > { %p568_p4 = pnand %p567_p1, %p741_p5 }
  0x2d   : > { %486 = vset.pattern.permute.xlu1 %v641_v3  ;;  %484 = vset.pattern.permute.xlu0 %v642_v4  ;;  %p573_p13 = por %p572_p12, %p571_p11 }
  0x2e   : > { %256 = vperm.xlu1 %486, %v202_v2   ;;  %244 = vperm.xlu0 %484, %v202_v2   ;;  %p569_p8 = pneg %p568_p4 }
  0x30   : > { %p574_p0 = pnand %p573_p13, %p569_p8 }
  0x36   : > { %487 = vset.pattern.permute.xlu1 %v643_v5  ;;  %489 = vset.pattern.permute.xlu0 %v641_v3 }
  0x37   : > { %207 = vperm.xlu1 %487, %v202_v2  }
  0x97   : > { %v226_v8 = vpop.permute.xlu1 %225  ;;  %v213_v9 = vpop.permute.xlu0 %212 }
  0x98   : > { %v228_v10 = vmul.f32 %v226_v8, %v204_v7  ;;  %v215_v11 = vmul.f32 %v213_v9, %v204_v7 }
  0x9a   : > { %230 = vrot.lane.b32.xlu0 %v228_v10, %s645_s17  ;;  %217 = vrot.lane.b32.xlu2 %v215_v11, %s646_s19 }
  0xa0   : > { %v257_v12 = vpop.permute.xlu1 %256  ;;  %v245_v13 = vpop.permute.xlu0 %244 }
  0xa1   : > { %v259_v14 = vmul.f32 %v257_v12, %v204_v7  ;;  %v247_v15 = vmul.f32 %v245_v13, %v204_v7 }
  0xa3   : > { %261 = vrot.lane.b32.xlu1 %v259_v14, %s645_s17  ;;  %249 = vrot.lane.b32.xlu2 %v247_v15, %s646_s19 }
  0xa9   : > { %v208_v20 = vpop.permute.xlu1 %207 }
  0xaa   : > { %v210_v21 = vmul.f32 %v208_v20, %v203_v19 }
  0xab   : > { %239 = vperm.xlu2 %488, %v202_v2  }
  0xf4   : > { %v218_v16 = vpop.permute.xlu2 %217 }
  0xf5   : > { %v219_v18 = vrot.slane %v218_v16, 4 }
  0xf7   : > { %v221_v22 = vsel %vm220_vm0, %v218_v16, %v219_v18 }
  0xf8   : > { %v223_v25 = vadd.f32 %v221_v22, %v210_v21 }
  0xfd   : > { %v250_v17 = vpop.permute.xlu2 %249 }
  0xfe   : > { %v251_v27 = vrot.slane %v250_v17, 4 }
 0x100   : > { %v252_v31 = vsel %vm220_vm0, %v250_v17, %v251_v27 }
 0x105   : > { %v240_v28 = vpop.permute.xlu2 %239 }
 0x106   : > { %v242_v30 = vmul.f32 %v240_v28, %v203_v19 }
 0x108   : > { %v254_v34 = vadd.f32 %v252_v31, %v242_v30 }
 0x10c   : > { %v231_v23 = vpop.permute.xlu0 %230 }
 0x10d   : > { %v232_v24 = vrot.slane %v231_v23, 4 }
 0x10f   : > { %v234_v26 = vsel %vm233_vm1, %v231_v23, %v232_v24 }
 0x110   : > { %v236_v29 = vadd.f32 %v234_v26, %v223_v25 }
 0x112   : > { %237 = vst [vmem:[%s201_s29] sm:$0xf] %v236_v29 }
 0x115   : > { %v262_v32 = vpop.permute.xlu1 %261 }
 0x116   : > { %v263_v33 = vrot.slane %v262_v32, 4 }
 0x118   : > { %v264_v35 = vsel %vm233_vm1, %v262_v32, %v263_v33 }
 0x119   : > { %v266_v36 = vadd.f32 %v264_v35, %v254_v34 }
 0x11b   : > { %267 = vst [vmem:[%s201_s29 + $0x4] sm:$0xf] %v266_v36 }
 0x11c   : > { %577 = shalt.err (!%p574_p0)
}
 0x11d   : > { %408 = dma.vmem_to_hbm [thread:$0]  (%p741_p5), %s285_s8, 128, %s287_s15, %s269_s12  }
 0x11e PF: > { %s298_s25 = sand.u32 1, %s616_s9   ;;  %p419_p3 = pnand %p387_p9, %p711_p6 }
 0x11f   : > { %s299_s3 = scalar_lea.sflag [#allocation4], %s298_s25 }
 0x120   : > { %p420_p7 = pneg %p419_p3 }
 0x122   : > { %611 = dma.done.wait (%p420_p7), %s299_s3, 128  }
 0x123   : > { %613 = vsyncadd (%p420_p7), %s299_s3, 4294967168  ;;  %s19_s14 = sadd.s32 1, %s636_s14   ;;  %s833_s9 = smov %s620_s10 }
 0x124   : > { %p16_p10 = scmp.ge.s32.totalorder %s19_s14, 4   ;;  %s834_s10 = smov %s624_s11 }
 0x125   : > { %s835_s11 = smov %s750_s6  ;;  %s836_s12 = smov %s632_s13 }
 0x126   : > { %s837_s13 = smov %s839_s27  ;;  %18 = sbr.rel (!%p16_p10) target bundleno = 7 (0x7), region = 78 }
 0x12b   :  { %305 = vsyncpa [#allocation3], 1 }
 0x12c   :  { %307 = vsyncpa [#allocation3 + $0x1], 1 }
 0x12d   :  { %308 = vsyncpa [#allocation6], 1 }
 0x12e   :  { %309 = vsyncpa [#allocation4], 1 }
 0x12f   :  { %311 = vsyncpa [#allocation4 + $0x1], 1 }

</bundles_post_ra>
